<compile_context>
chip_gen: v7x
topology: tpu7x:2x2x1
jax: 0.10.0
libtpu: 0.0.40
codegen_flags: <defaults>
</compile_context>

<pallas_src>
import functools

import jax
import jax.numpy as jnp
import numpy as np
from jax.experimental import pallas as pl
from jax.experimental.pallas import tpu as pltpu

_LANE = 128


def _round_up(n, m):
    return ((n + m - 1) // m) * m


def autoencoder_kernel(x_ref, wg_ref, bg_ref, wh_ref, bh_ref, wf_ref, bf_ref,
                       o_ref):
    """Fused forward pass for one (batch_tile, nq_p) slab; weights VMEM-resident."""
    x = x_ref[...]                                        # bf16 (bt, nq_p)

    # g: nq -> k, sigmoid.  bf16 MXU matmul, f32 accumulate; epilogue in f32.
    z1 = jnp.dot(x, wg_ref[...], preferred_element_type=jnp.float32)
    h1 = jax.nn.sigmoid(z1 + bg_ref[...])

    # h: k -> k+50, sigmoid.
    z2 = jnp.dot(h1.astype(wh_ref.dtype), wh_ref[...],
                 preferred_element_type=jnp.float32)
    h2 = jax.nn.sigmoid(z2 + bh_ref[...])

    # dropout(p=0.5): identity in eval mode.
    # TODO(synk): training-mode dropout (mask + 1/(1-p) scale via pltpu.prng_*).

    # f: k+50 -> nq, sigmoid.
    z3 = jnp.dot(h2.astype(wf_ref.dtype), wf_ref[...],
                 preferred_element_type=jnp.float32)
    y = jax.nn.sigmoid(z3 + bf_ref[...])

    o_ref[...] = y.astype(o_ref.dtype)


def init_params(key, num_question, k=100):
    """nn.Linear-style init U(-1/sqrt(in), 1/sqrt(in)); weights stored (in, out)."""
    def linear(key, fan_in, fan_out):
        kw, kb = jax.random.split(key)
        bound = 1.0 / np.sqrt(fan_in)
        w = jax.random.uniform(kw, (fan_in, fan_out), jnp.float32, -bound, bound)
        b = jax.random.uniform(kb, (1, fan_out), jnp.float32, -bound, bound)
        return w, b

    kg, kh, kf = jax.random.split(key, 3)
    wg, bg = linear(kg, num_question, k)          # g: nq   -> k
    wh, bh = linear(kh, k, k + 50)                # h: k    -> k+50
    wf, bf = linear(kf, k + 50, num_question)     # f: k+50 -> nq
    return dict(wg=wg, bg=bg, wh=wh, bh=bh, wf=wf, bf=bf)


def prepare_params(params, compute_dtype=jnp.bfloat16):
    """Zero-pad every feature dim to a multiple of 128 and cast weights to bf16.

    Padded *rows* of wh/wf must be zero: the padded hidden columns carry
    sigmoid(0) = 0.5, and zero rows guarantee they contribute nothing.
    Biases stay f32 (epilogue runs in f32).
    """
    wg, bg = params["wg"], params["bg"]
    wh, bh = params["wh"], params["bh"]
    wf, bf = params["wf"], params["bf"]
    nq, k = wg.shape
    kh = wh.shape[1]
    nq_p, k_p, kh_p = (_round_up(d, _LANE) for d in (nq, k, kh))

    def pad2(a, rows, cols):
        return jnp.pad(a, ((0, rows - a.shape[0]), (0, cols - a.shape[1])))

    return dict(
        wg=pad2(wg, nq_p, k_p).astype(compute_dtype),
        bg=pad2(bg, 1, k_p).astype(jnp.float32),
        wh=pad2(wh, k_p, kh_p).astype(compute_dtype),
        bh=pad2(bh, 1, kh_p).astype(jnp.float32),
        wf=pad2(wf, kh_p, nq_p).astype(compute_dtype),
        bf=pad2(bf, 1, nq_p).astype(jnp.float32),
    )


def autoencoder_forward(x, padded_params, *, max_batch_tile=256,
                        compute_dtype=jnp.bfloat16):
    """x: (B, num_question) f32. padded_params: output of prepare_params."""
    B, nq = x.shape
    wg, bg = padded_params["wg"], padded_params["bg"]
    wh, bh = padded_params["wh"], padded_params["bh"]
    wf, bf = padded_params["wf"], padded_params["bf"]
    nq_p = wg.shape[0]

    # Batch tiling: whole batch in one step when small, 256-row MXU-filling
    # tiles (sharded across TCs) when large.  No divisibility requirement.
    b8 = _round_up(B, 8)
    batch_tile = min(max_batch_tile, b8)
    B_p = _round_up(b8, batch_tile)
    grid = (B_p // batch_tile,)

    xp = x
    if (B_p, nq_p) != (B, nq):
        xp = jnp.pad(x, ((0, B_p - B), (0, nq_p - nq)))
    xp = xp.astype(compute_dtype)

    def full_spec(arr):
        # whole array resident in VMEM, same block every grid step
        return pl.BlockSpec(arr.shape, lambda i: (0,) * arr.ndim)

    out = pl.pallas_call(
        autoencoder_kernel,
        out_shape=jax.ShapeDtypeStruct((B_p, nq_p), jnp.float32),
        grid=grid,
        in_specs=[
            pl.BlockSpec((batch_tile, nq_p), lambda i: (i, 0)),   # x tile
            full_spec(wg), full_spec(bg),
            full_spec(wh), full_spec(bh),
            full_spec(wf), full_spec(bf),
        ],
        out_specs=pl.BlockSpec((batch_tile, nq_p), lambda i: (i, 0)),
        compiler_params=pltpu.CompilerParams(
            dimension_semantics=("parallel",)),
    )(xp, wg, bg, wh, bh, wf, bf)

    return out[:B, :nq]


def reference_forward(x, p, compute_dtype=jnp.bfloat16):
    """Pure-JAX reference with the same bf16 operand quantization as the kernel."""
    q = lambda a: a.astype(compute_dtype).astype(jnp.float32)
    h1 = jax.nn.sigmoid(q(x) @ q(p["wg"]) + p["bg"])
    h2 = jax.nn.sigmoid(q(h1) @ q(p["wh"]) + p["bh"])
    return jax.nn.sigmoid(q(h2) @ q(p["wf"]) + p["bf"])


if __name__ == "__main__":
    num_question = 200   # deliberately not lane-aligned: exercises the padding path
    k = 100              # module default -> hidden sizes 100 and 150
    batch = 16           # small batch -> single grid step

    key = jax.random.PRNGKey(0)
    kx, kp = jax.random.split(key)

    params = init_params(kp, num_question, k)
    padded = jax.tree_util.tree_map(jax.block_until_ready,
                                    prepare_params(params))
    # user vectors in [0, 1] (sparse-response style input)
    x = jax.random.uniform(kx, (batch, num_question), jnp.float32)

    fwd = jax.jit(functools.partial(autoencoder_forward, max_batch_tile=256))
    out = jax.block_until_ready(fwd(x, padded))

    ref = jax.block_until_ready(reference_forward(x, params))
    np.testing.assert_allclose(np.asarray(out), np.asarray(ref),
                               rtol=2e-5, atol=2e-5)

    print("KERNEL_OK")
</pallas_src>

<mosaic_0001>
module attributes {stable_mosaic.version = 11 : i64} {
  func.func @autoencoder_kernel(%arg0: i32, %arg1: memref<16x256xbf16, #tpu.memory_space<vmem>>, %arg2: memref<256x128xbf16, #tpu.memory_space<vmem>>, %arg3: memref<1x128xf32, #tpu.memory_space<vmem>>, %arg4: memref<128x256xbf16, #tpu.memory_space<vmem>>, %arg5: memref<1x256xf32, #tpu.memory_space<vmem>>, %arg6: memref<256x256xbf16, #tpu.memory_space<vmem>>, %arg7: memref<1x256xf32, #tpu.memory_space<vmem>>, %arg8: memref<16x256xf32, #tpu.memory_space<vmem>>) attributes {dimension_semantics = [#tpu.dimension_semantics<parallel>], iteration_bounds = array<i64: 1>, scalar_prefetch = 0 : i64, scratch_operands = 0 : i64, tpu.core_type = #tpu.core_type<tc>, window_params = [{transform_indices = @transform_0, window_bounds = array<i64: 16, 256>}, {pipeline_mode = #tpu.pipeline_mode<synchronous>, transform_indices = @transform_1, window_bounds = array<i64: 256, 128>}, {pipeline_mode = #tpu.pipeline_mode<synchronous>, transform_indices = @transform_2, window_bounds = array<i64: 1, 128>}, {pipeline_mode = #tpu.pipeline_mode<synchronous>, transform_indices = @transform_3, window_bounds = array<i64: 128, 256>}, {pipeline_mode = #tpu.pipeline_mode<synchronous>, transform_indices = @transform_4, window_bounds = array<i64: 1, 256>}, {pipeline_mode = #tpu.pipeline_mode<synchronous>, transform_indices = @transform_5, window_bounds = array<i64: 256, 256>}, {pipeline_mode = #tpu.pipeline_mode<synchronous>, transform_indices = @transform_6, window_bounds = array<i64: 1, 256>}, {transform_indices = @transform_7, window_bounds = array<i64: 16, 256>}]} {
    %c0 = arith.constant 0 : index
    %c0_0 = arith.constant 0 : index
    %0 = vector.load %arg1[%c0, %c0_0] : memref<16x256xbf16, #tpu.memory_space<vmem>>, vector<16x256xbf16>
    %c0_1 = arith.constant 0 : index
    %c0_2 = arith.constant 0 : index
    %1 = vector.load %arg2[%c0_1, %c0_2] : memref<256x128xbf16, #tpu.memory_space<vmem>>, vector<256x128xbf16>
    %cst = arith.constant dense<0.000000e+00> : vector<16x128xf32>
    %2 = tpu.matmul %0, %1, %cst {dimension_numbers = #tpu.dot_dimension_numbers<[1], [0], [0], [1], [0, 0, 1, 1], [], []>} : vector<16x256xbf16>, vector<256x128xbf16>, vector<16x128xf32> -> vector<16x128xf32>
    %c0_3 = arith.constant 0 : index
    %c0_4 = arith.constant 0 : index
    %3 = vector.load %arg3[%c0_3, %c0_4] : memref<1x128xf32, #tpu.memory_space<vmem>>, vector<1x128xf32>
    %4 = vector.broadcast %3 : vector<1x128xf32> to vector<16x128xf32>
    %5 = arith.addf %2, %4 : vector<16x128xf32>
    %6 = arith.negf %5 : vector<16x128xf32>
    %7 = math.exp %6 : vector<16x128xf32>
    %cst_5 = arith.constant 1.000000e+00 : f32
    %8 = vector.broadcast %cst_5 : f32 to vector<16x128xf32>
    %9 = arith.addf %8, %7 : vector<16x128xf32>
    %10 = arith.divf %8, %9 : vector<16x128xf32>
    %11 = arith.truncf %10 : vector<16x128xf32> to vector<16x128xbf16>
    %c0_6 = arith.constant 0 : index
    %c0_7 = arith.constant 0 : index
    %12 = vector.load %arg4[%c0_6, %c0_7] : memref<128x256xbf16, #tpu.memory_space<vmem>>, vector<128x256xbf16>
    %cst_8 = arith.constant dense<0.000000e+00> : vector<16x256xf32>
    %13 = tpu.matmul %11, %12, %cst_8 {dimension_numbers = #tpu.dot_dimension_numbers<[1], [0], [0], [1], [0, 0, 1, 1], [], []>} : vector<16x128xbf16>, vector<128x256xbf16>, vector<16x256xf32> -> vector<16x256xf32>
    %c0_9 = arith.constant 0 : index
    %c0_10 = arith.constant 0 : index
    %14 = vector.load %arg5[%c0_9, %c0_10] : memref<1x256xf32, #tpu.memory_space<vmem>>, vector<1x256xf32>
    %15 = vector.broadcast %14 : vector<1x256xf32> to vector<16x256xf32>
    %16 = arith.addf %13, %15 : vector<16x256xf32>
    %17 = arith.negf %16 : vector<16x256xf32>
    %18 = math.exp %17 : vector<16x256xf32>
    %cst_11 = arith.constant 1.000000e+00 : f32
    %19 = vector.broadcast %cst_11 : f32 to vector<16x256xf32>
    %20 = arith.addf %19, %18 : vector<16x256xf32>
    %21 = arith.divf %19, %20 : vector<16x256xf32>
    %22 = arith.truncf %21 : vector<16x256xf32> to vector<16x256xbf16>
    %c0_12 = arith.constant 0 : index
    %c0_13 = arith.constant 0 : index
    %23 = vector.load %arg6[%c0_12, %c0_13] : memref<256x256xbf16, #tpu.memory_space<vmem>>, vector<256x256xbf16>
    %cst_14 = arith.constant dense<0.000000e+00> : vector<16x256xf32>
    %24 = tpu.matmul %22, %23, %cst_14 {dimension_numbers = #tpu.dot_dimension_numbers<[1], [0], [0], [1], [0, 0, 1, 1], [], []>} : vector<16x256xbf16>, vector<256x256xbf16>, vector<16x256xf32> -> vector<16x256xf32>
    %c0_15 = arith.constant 0 : index
    %c0_16 = arith.constant 0 : index
    %25 = vector.load %arg7[%c0_15, %c0_16] : memref<1x256xf32, #tpu.memory_space<vmem>>, vector<1x256xf32>
    %26 = vector.broadcast %25 : vector<1x256xf32> to vector<16x256xf32>
    %27 = arith.addf %24, %26 : vector<16x256xf32>
    %28 = arith.negf %27 : vector<16x256xf32>
    %29 = math.exp %28 : vector<16x256xf32>
    %cst_17 = arith.constant 1.000000e+00 : f32
    %30 = vector.broadcast %cst_17 : f32 to vector<16x256xf32>
    %31 = arith.addf %30, %29 : vector<16x256xf32>
    %32 = arith.divf %30, %31 : vector<16x256xf32>
    %c0_18 = arith.constant 0 : index
    %c0_19 = arith.constant 0 : index
    %33 = vector.load %arg8[%c0_18, %c0_19] : memref<16x256xf32, #tpu.memory_space<vmem>>, vector<16x256xf32>
    tpu.vector_store %arg8[%c0_18, %c0_19], %32 {strides = array<i32>} : memref<16x256xf32, #tpu.memory_space<vmem>>, vector<16x256xf32>,
    return
  }
  func.func @transform_0(%arg0: i32) -> (i32, i32) {
    %c0_i32 = arith.constant 0 : i32
    %c0_i32_0 = arith.constant 0 : i32
    return %arg0, %c0_i32 : i32, i32
  }
  func.func @transform_1(%arg0: i32) -> (i32, i32) {
    %c0_i32 = arith.constant 0 : i32
    %c0_i32_0 = arith.constant 0 : i32
    %c0_i32_1 = arith.constant 0 : i32
    return %c0_i32, %c0_i32_0 : i32, i32
  }
  func.func @transform_2(%arg0: i32) -> (i32, i32) {
    %c0_i32 = arith.constant 0 : i32
    %c0_i32_0 = arith.constant 0 : i32
    %c0_i32_1 = arith.constant 0 : i32
    return %c0_i32, %c0_i32_0 : i32, i32
  }
  func.func @transform_3(%arg0: i32) -> (i32, i32) {
    %c0_i32 = arith.constant 0 : i32
    %c0_i32_0 = arith.constant 0 : i32
    %c0_i32_1 = arith.constant 0 : i32
    return %c0_i32, %c0_i32_0 : i32, i32
  }
  func.func @transform_4(%arg0: i32) -> (i32, i32) {
    %c0_i32 = arith.constant 0 : i32
    %c0_i32_0 = arith.constant 0 : i32
    %c0_i32_1 = arith.constant 0 : i32
    return %c0_i32, %c0_i32_0 : i32, i32
  }
  func.func @transform_5(%arg0: i32) -> (i32, i32) {
    %c0_i32 = arith.constant 0 : i32
    %c0_i32_0 = arith.constant 0 : i32
    %c0_i32_1 = arith.constant 0 : i32
    return %c0_i32, %c0_i32_0 : i32, i32
  }
  func.func @transform_6(%arg0: i32) -> (i32, i32) {
    %c0_i32 = arith.constant 0 : i32
    %c0_i32_0 = arith.constant 0 : i32
    %c0_i32_1 = arith.constant 0 : i32
    return %c0_i32, %c0_i32_0 : i32, i32
  }
  func.func @transform_7(%arg0: i32) -> (i32, i32) {
    %c0_i32 = arith.constant 0 : i32
    %c0_i32_0 = arith.constant 0 : i32
    return %arg0, %c0_i32 : i32, i32
  }
}

</mosaic_0001>

<bundles_post_ra>
// kernel: autoencoder_forward.1
= control target key start
LH: loop header
LB: loop body
LE: loop exit
PB: predicated region body
PF: predicated region fallthrough
CT: control target
= control target key end

     0   :  { %12 = vsyncpa [#allocation3], 0  ;;  %s1195_s0 = inlined_call_operand.vmem [shape: bf16[16,256], index: 0, kind: input, shape index: {}]   ;;  %s1196_s1 = inlined_call_operand.hbm [shape: bf16[256,128], index: 1, kind: input, shape index: {}]   ;;  %s1197_s2 = inlined_call_operand.vmem [shape: f32[1,128], index: 2, kind: input, shape index: {}]   ;;  %s1198_s3 = inlined_call_operand.hbm [shape: bf16[128,256], index: 3, kind: input, shape index: {}]   ;;  %s1199_s4 = inlined_call_operand.vmem [shape: f32[1,256], index: 4, kind: input, shape index: {}]   ;;  %s1200_s5 = inlined_call_operand.hbm [shape: bf16[256,256], index: 5, kind: input, shape index: {}]   ;;  %s1201_s6 = inlined_call_operand.vmem [shape: f32[1,256], index: 6, kind: input, shape index: {}]   ;;  %s1202_s7 = inlined_call_operand.hbm [shape: f32[16,256], index: 7, kind: output, shape index: {}]  }
   0x1   :  { %13 = vsyncpa [#allocation6], 0 }
   0x2   :  { %14 = vsyncpa [#allocation4], 0  ;;  %s1075_s24 = smov [#allocation5]   ;;  %s981_s28 = scalar_lea.hbm %s1198_s3, 2048 }
   0x3   :  { %s36_s25 = sshll.u32 %s1075_s24, 4  ;;  %p982_p0 = scmp.ne.s32.totalorder %s1198_s3, %s981_s28  ;;  %s37_s25 = int_to_ptr.vmem [resolvable:$true] %s36_s25 }
   0x4   :  { %p985_p1 = scmp.lt.u32.totalorder %s981_s28, %s1198_s3 }
   0x6   :  { %p987_p2 = pnand %p985_p1, %p982_p0 }
   0x8   :  { %990 = shalt.err (!%p987_p2)
}
   0x9   :  { %s991_s10 = scalar_lea.vmem %s37_s25, 2048  ;;  %p996_p4 = scmp.lt.s32.totalorder %s37_s25, %s37_s25 }
   0xa   :  { %p992_p3 = scmp.ne.s32.totalorder %s37_s25, %s991_s10  ;;  %p997_p5 = scmp.lt.s32.totalorder %s991_s10, %s991_s10 }
   0xc   :  { %p998_p6 = por %p997_p5, %p996_p4 }
   0xe   :  { %p999_p7 = pnand %p998_p6, %p992_p3 }
  0x10   :  { %1002 = shalt.err (!%p999_p7)
}
  0x11   :  { %s1076_s11 = smov 128   ;;  %s1077_s12 = smov 8  }
  0x12   :  { %42 = dma.hbm_to_vmem [thread:$0]  %s1198_s3, 2048, %s37_s25, [#allocation6], %s1076_s11, %s1076_s11, %s1077_s12  }
  0x13   :  { %s1078_s15 = smov [#allocation2]   ;;  %s1003_s19 = scalar_lea.hbm %s1196_s1, 2048 }
  0x14   :  { %s22_s16 = sshll.u32 %s1078_s15, 4  ;;  %p1004_p8 = scmp.ne.s32.totalorder %s1196_s1, %s1003_s19  ;;  %s23_s16 = int_to_ptr.vmem [resolvable:$true] %s22_s16 }
  0x15   :  { %p1007_p9 = scmp.lt.u32.totalorder %s1003_s19, %s1196_s1 }
  0x17   :  { %p1009_p10 = pnand %p1007_p9, %p1004_p8 }
  0x19   :  { %1012 = shalt.err (!%p1009_p10)
}
  0x1a   :  { %s1013_s24 = scalar_lea.vmem %s23_s16, 2048  ;;  %p1018_p12 = scmp.lt.s32.totalorder %s23_s16, %s23_s16 }
  0x1b   :  { %p1014_p11 = scmp.ne.s32.totalorder %s23_s16, %s1013_s24  ;;  %p1019_p13 = scmp.lt.s32.totalorder %s1013_s24, %s1013_s24 }
  0x1d   :  { %p1020_p0 = por %p1019_p13, %p1018_p12 }
  0x1f   :  { %p1021_p1 = pnand %p1020_p0, %p1014_p11 }
  0x21   :  { %1024 = shalt.err (!%p1021_p1)
}
  0x22   :  { %s1079_s3 = smov 64   ;;  %s1080_s25 = smov 4  }
  0x23   :  { %28 = dma.hbm_to_vmem [thread:$0]  %s1196_s1, 2048, %s23_s16, [#allocation3], %s1079_s3, %s1079_s3, %s1080_s25  }
  0x24   :  { %s1081_s28 = smov [#allocation7]   ;;  %s1025_s9 = scalar_lea.hbm %s1200_s5, 4096 }
  0x25   :  { %s50_s29 = sshll.u32 %s1081_s28, 4  ;;  %p1026_p2 = scmp.ne.s32.totalorder %s1200_s5, %s1025_s9  ;;  %s51_s29 = int_to_ptr.vmem [resolvable:$true] %s50_s29 }
  0x26   :  { %p1029_p3 = scmp.lt.u32.totalorder %s1025_s9, %s1200_s5 }
  0x28   :  { %p1031_p4 = pnand %p1029_p3, %p1026_p2 }
  0x2a   :  { %1034 = shalt.err (!%p1031_p4)
}
  0x2b   :  { %s1035_s17 = scalar_lea.vmem %s51_s29, 4096  ;;  %p1040_p6 = scmp.lt.s32.totalorder %s51_s29, %s51_s29 }
  0x2c   :  { %p1036_p5 = scmp.ne.s32.totalorder %s51_s29, %s1035_s17  ;;  %p1041_p7 = scmp.lt.s32.totalorder %s1035_s17, %s1035_s17 }
  0x2e   :  { %p1042_p8 = por %p1041_p7, %p1040_p6 }
  0x30   :  { %p1043_p9 = pnand %p1042_p8, %p1036_p5 }
  0x32   :  { %1046 = shalt.err (!%p1043_p9)
}
  0x33   :  { %56 = dma.hbm_to_vmem [thread:$0]  %s1200_s5, 4096, %s51_s29, [#allocation6], %s1076_s11, %s1076_s11, %s1077_s12  }
  0x34   :  { %1069 = dma.done.wait [#allocation3], 2048  }
  0x35   :  { %1070 = vsyncadd [#allocation3], 4294965248 }
  0x36   :  { %1071 = dma.done.wait [#allocation6], 6144  }
  0x37   :  { %1072 = vsyncadd [#allocation6], 4294961152  ;;  %v850_v0 = vld [vmem:[#allocation2 + $0x40] sm:$0xff]   ;;  %v852_v2 = vld [vmem:[#allocation2 + $0x48] sm:$0xff]   ;;  %v1082_v32 = vmov 0  }
  0x38   :  { %v851_v1 = vld [vmem:[#allocation2] sm:$0xff]   ;;  %817 = vmatprep.subr.bf16.mxu1 %v850_v0  ;;  %v853_v3 = vld [vmem:[#allocation2 + $0x8] sm:$0xff]   ;;  %v854_v4 = vld [vmem:[#allocation2 + $0x50] sm:$0xff]  }
  0x39   :  { %818 = vmatpush3.bf16.msra.mxu1 %v851_v1  ;;  %v855_v5 = vld [vmem:[#allocation2 + $0x10] sm:$0xff]   ;;  %v856_v6 = vld [vmem:[#allocation2 + $0x58] sm:$0xff]   ;;  %v858_v8 = vld [vmem:[#allocation2 + $0x60] sm:$0xff]  }
  0x3a   :  { %819 = vmatprep.subr.bf16.mxu1 %v852_v2  ;;  %v857_v7 = vld [vmem:[#allocation2 + $0x18] sm:$0xff]   ;;  %v859_v9 = vld [vmem:[#allocation2 + $0x20] sm:$0xff]   ;;  %v860_v10 = vld [vmem:[#allocation2 + $0x68] sm:$0xff]  }
  0x3b   :  { %v861_v11 = vld [vmem:[#allocation2 + $0x28] sm:$0xff]   ;;  %v862_v13 = vld [vmem:[#allocation2 + $0x70] sm:$0xff]   ;;  %v864_v15 = vld [vmem:[#allocation2 + $0x78] sm:$0xff]  }
  0x3c   :  { %v868_v12 = vld [vmem:[%s1195_s0 + $0x4] ss:$8 sps:$4 sm:$0xff]   ;;  %v863_v14 = vld [vmem:[#allocation2 + $0x30] sm:$0xff]   ;;  %v865_v16 = vld [vmem:[#allocation2 + $0x38] sm:$0xff]  }
  0x3d   :  { %820 = vmatpush3.bf16.msra.mxu1 %v853_v3  ;;  %248 = vmatprep.mubr.bf16.mxu1 %v868_v12  ;;  %v866_v17 = vld [vmem:[%s1195_s0] ss:$8 sps:$4 sm:$0xff]   ;;  %v871_v18 = vld [vmem:[#allocation5 + $0x4] ss:$8 sps:$4 sm:$0xff]   ;;  %v874_v20 = vld [vmem:[#allocation5 + $0x14] ss:$8 sps:$4 sm:$0xff]  }
  0x3e   :  { %821 = vmatprep.subr.bf16.mxu1 %v854_v4  ;;  %v869_v19 = vld [vmem:[#allocation5] ss:$8 sps:$4 sm:$0xff]   ;;  %v872_v21 = vld [vmem:[#allocation5 + $0x10] ss:$8 sps:$4 sm:$0xff]   ;;  %v877_v22 = vld [vmem:[#allocation5 + $0x24] ss:$8 sps:$4 sm:$0xff]  }
  0x3f   :  { %v875_v23 = vld [vmem:[#allocation5 + $0x20] ss:$8 sps:$4 sm:$0xff]   ;;  %v880_v24 = vld [vmem:[#allocation5 + $0x34] ss:$8 sps:$4 sm:$0xff]   ;;  %v878_v25 = vld [vmem:[#allocation5 + $0x30] ss:$8 sps:$4 sm:$0xff]  }
  0x40   :  { %v883_v26 = vld [vmem:[#allocation5 + $0x44] ss:$8 sps:$4 sm:$0xff]   ;;  %v881_v27 = vld [vmem:[#allocation5 + $0x40] ss:$8 sps:$4 sm:$0xff]   ;;  %v886_v28 = vld [vmem:[#allocation5 + $0x54] ss:$8 sps:$4 sm:$0xff]  }
  0x41   :  { %822 = vmatpush3.bf16.msra.mxu1 %v855_v5  ;;  %v884_v29 = vld [vmem:[#allocation5 + $0x50] ss:$8 sps:$4 sm:$0xff]   ;;  %v889_v30 = vld [vmem:[#allocation5 + $0x64] ss:$8 sps:$4 sm:$0xff]   ;;  %v887_v31 = vld [vmem:[#allocation5 + $0x60] ss:$8 sps:$4 sm:$0xff]  }
  0x42   :  { %823 = vmatprep.subr.bf16.mxu1 %v856_v6  ;;  %v892_v33 = vld [vmem:[#allocation5 + $0x74] ss:$8 sps:$4 sm:$0xff]   ;;  %v890_v34 = vld [vmem:[#allocation5 + $0x70] ss:$8 sps:$4 sm:$0xff]   ;;  %v893_v35 = vld [vmem:[#allocation7 + $0x4] ss:$8 sps:$4 sm:$0xff]  }
  0x43   :  { %v895_v36 = vld [vmem:[#allocation7] ss:$8 sps:$4 sm:$0xff]   ;;  %v896_v37 = vld [vmem:[#allocation7 + $0x14] ss:$8 sps:$4 sm:$0xff]   ;;  %651 = vmatprep.subr.bf16.mxu0 %v893_v35  ;;  %v898_v38 = vld [vmem:[#allocation7 + $0x10] ss:$8 sps:$4 sm:$0xff]  }
  0x44   :  { %652 = vmatpush1.bf16.msra.mxu0 %v895_v36  ;;  %v899_v39 = vld [vmem:[#allocation7 + $0x24] ss:$8 sps:$4 sm:$0xff]   ;;  %v901_v40 = vld [vmem:[#allocation7 + $0x20] ss:$8 sps:$4 sm:$0xff]   ;;  %v902_v41 = vld [vmem:[#allocation7 + $0x34] ss:$8 sps:$4 sm:$0xff]  }
  0x45   :  { %824 = vmatpush3.bf16.msra.mxu1 %v857_v7  ;;  %653 = vmatprep.subr.bf16.mxu0 %v896_v37  ;;  %v904_v42 = vld [vmem:[#allocation7 + $0x30] ss:$8 sps:$4 sm:$0xff]   ;;  %v905_v43 = vld [vmem:[#allocation7 + $0x44] ss:$8 sps:$4 sm:$0xff]   ;;  %v907_v44 = vld [vmem:[#allocation7 + $0x40] ss:$8 sps:$4 sm:$0xff]  }
  0x46   :  { %825 = vmatprep.subr.bf16.mxu1 %v858_v8  ;;  %v908_v45 = vld [vmem:[#allocation7 + $0x54] ss:$8 sps:$4 sm:$0xff]   ;;  %v910_v46 = vld [vmem:[#allocation7 + $0x50] ss:$8 sps:$4 sm:$0xff]   ;;  %v911_v47 = vld [vmem:[#allocation7 + $0x64] ss:$8 sps:$4 sm:$0xff]  }
  0x47   :  { %v913_v48 = vld [vmem:[#allocation7 + $0x60] ss:$8 sps:$4 sm:$0xff]   ;;  %v914_v49 = vld [vmem:[#allocation7 + $0x74] ss:$8 sps:$4 sm:$0xff]   ;;  %v916_v4 = vld [vmem:[#allocation7 + $0x70] ss:$8 sps:$4 sm:$0xff]  }
  0x48   :  { %654 = vmatpush1.bf16.msra.mxu0 %v898_v38  ;;  %v740_v51 = vld [vmem:[%s1197_s2] ss:$0 sm:$0xff]  ;;  %v917_v5 = vld [vmem:[#allocation7 + $0x84] ss:$8 sps:$4 sm:$0xff]   ;;  %v920_v7 = vld [vmem:[#allocation7 + $0x94] ss:$8 sps:$4 sm:$0xff]  }
  0x49   :  { %826 = vmatpush3.bf16.msra.mxu1 %v859_v9  ;;  %655 = vmatprep.subr.bf16.mxu0 %v899_v39  ;;  %v919_v6 = vld [vmem:[#allocation7 + $0x80] ss:$8 sps:$4 sm:$0xff]   ;;  %v922_v8 = vld [vmem:[#allocation7 + $0x90] ss:$8 sps:$4 sm:$0xff]   ;;  %v923_v9 = vld [vmem:[#allocation7 + $0xa4] ss:$8 sps:$4 sm:$0xff]  }
  0x4a   :  { %827 = vmatprep.subr.bf16.mxu1 %v860_v10  ;;  %v925_v10 = vld [vmem:[#allocation7 + $0xa0] ss:$8 sps:$4 sm:$0xff]   ;;  %v928_v12 = vld [vmem:[#allocation7 + $0xb0] ss:$8 sps:$4 sm:$0xff]  }
  0x4c   :  { %656 = vmatpush1.bf16.msra.mxu0 %v901_v40 }
  0x4d   :  { %828 = vmatpush3.bf16.msra.mxu1 %v861_v11  ;;  %657 = vmatprep.subr.bf16.mxu0 %v902_v41  ;;  %v926_v11 = vld [vmem:[#allocation7 + $0xb4] ss:$8 sps:$4 sm:$0xff]  }
  0x4e   :  { %829 = vmatprep.subr.bf16.mxu1 %v862_v13  ;;  %v929_v13 = vld [vmem:[#allocation7 + $0xc4] ss:$8 sps:$4 sm:$0xff]  }
  0x50   :  { %658 = vmatpush1.bf16.msra.mxu0 %v904_v42 }
  0x51   :  { %830 = vmatpush3.bf16.msra.mxu1 %v863_v14  ;;  %659 = vmatprep.subr.bf16.mxu0 %v905_v43  ;;  %v931_v14 = vld [vmem:[#allocation7 + $0xc0] ss:$8 sps:$4 sm:$0xff]  }
  0x52   :  { %831 = vmatprep.subr.bf16.mxu1 %v864_v15  ;;  %v932_v15 = vld [vmem:[#allocation7 + $0xd4] ss:$8 sps:$4 sm:$0xff]  }
  0x54   :  { %660 = vmatpush1.bf16.msra.mxu0 %v907_v44 }
  0x55   :  { %832 = vmatpush3.bf16.msra.mxu1 %v865_v16  ;;  %661 = vmatprep.subr.bf16.mxu0 %v908_v45  ;;  %v934_v16 = vld [vmem:[#allocation7 + $0xd0] ss:$8 sps:$4 sm:$0xff]  }
  0x56   :  { %378 = vmatprep.subr.bf16.mxu1 %v871_v18  ;;  %v937_v18 = vld [vmem:[#allocation7 + $0xe0] ss:$8 sps:$4 sm:$0xff]  }
  0x58   :  { %249 = vmatmul.mubr.bf16.vlgmr.msra.gmra.mrb[0].mxu1 %v866_v17  ;;  %662 = vmatpush1.bf16.msra.mxu0 %v910_v46  ;;  %v935_v17 = vld [vmem:[#allocation7 + $0xe4] ss:$8 sps:$4 sm:$0xff]  }
  0x59   :  { %379 = vmatpush1.bf16.msra.mxu1 %v869_v19  ;;  %410 = vmatprep.mubr.bf16.mxu1 %v1082_v32  ;;  %v938_v19 = vld [vmem:[#allocation7 + $0xf4] ss:$8 sps:$4 sm:$0xff]  }
  0x5a   :  { %380 = vmatprep.subr.bf16.mxu1 %v874_v20  ;;  %663 = vmatprep.subr.bf16.mxu0 %v911_v47  ;;  %v940_v20 = vld [vmem:[#allocation7 + $0xf0] ss:$8 sps:$4 sm:$0xff]  }
  0x5c   :  { %664 = vmatpush1.bf16.msra.mxu0 %v913_v48 }
  0x5d   :  { %381 = vmatpush1.bf16.msra.mxu1 %v872_v21  ;;  %665 = vmatprep.subr.bf16.mxu0 %v914_v49  ;;  %v288_v21 = vlaneseq }
  0x5e   :  { %382 = vmatprep.subr.bf16.mxu1 %v877_v22 }
  0x5f   :  { %v289_v22 = vshrl.u32 %v288_v21, 7 }
  0x60   :  { %666 = vmatpush1.bf16.msra.mxu0 %v916_v4 }
  0x61   :  { %383 = vmatpush1.bf16.msra.mxu1 %v875_v23  ;;  %667 = vmatprep.subr.bf16.mxu0 %v917_v5  ;;  %v290_v23 = vsub.s32 0, %v289_v22 }
  0x62   :  { %384 = vmatprep.subr.bf16.mxu1 %v880_v24  ;;  %v286_v24 = vld [vmem:[%s1199_s4] sm:$0x3] }
  0x64   :  { %668 = vmatpush1.bf16.msra.mxu0 %v919_v6 }
  0x65   :  { %385 = vmatpush1.bf16.msra.mxu1 %v878_v25  ;;  %669 = vmatprep.subr.bf16.mxu0 %v920_v7  ;;  %v294_v25 = vsub.s32 1, %v289_v22 }
  0x66   :  { %386 = vmatprep.subr.bf16.mxu1 %v883_v26  ;;  %v291_v26 = vrot.slane %v286_v24, %v290_v23 }
  0x68   :  { %670 = vmatpush1.bf16.msra.mxu0 %v922_v8 }
  0x69   :  { %387 = vmatpush1.bf16.msra.mxu1 %v881_v27  ;;  %671 = vmatprep.subr.bf16.mxu0 %v923_v9  ;;  %v295_v27 = vrot.slane %v286_v24, %v294_v25 }
  0x6a   :  { %388 = vmatprep.subr.bf16.mxu1 %v886_v28 }
  0x6c   :  { %672 = vmatpush1.bf16.msra.mxu0 %v925_v10 }
  0x6d   :  { %389 = vmatpush1.bf16.msra.mxu1 %v884_v29  ;;  %673 = vmatprep.subr.bf16.mxu0 %v926_v11 }
  0x6e   :  { %390 = vmatprep.subr.bf16.mxu1 %v889_v30 }
  0x70   :  { %674 = vmatpush1.bf16.msra.mxu0 %v928_v12 }
  0x71   :  { %391 = vmatpush1.bf16.msra.mxu1 %v887_v31  ;;  %675 = vmatprep.subr.bf16.mxu0 %v929_v13 }
  0x72   :  { %392 = vmatprep.subr.bf16.mxu1 %v892_v33 }
  0x74   :  { %676 = vmatpush1.bf16.msra.mxu0 %v931_v14 }
  0x75   :  { %393 = vmatpush1.bf16.msra.mxu1 %v890_v34  ;;  %677 = vmatprep.subr.bf16.mxu0 %v932_v15 }
  0x78   :  { %678 = vmatpush1.bf16.msra.mxu0 %v934_v16 }
  0x79   :  { %679 = vmatprep.subr.bf16.mxu0 %v935_v17 }
  0x7c   :  { %680 = vmatpush1.bf16.msra.mxu0 %v937_v18 }
  0x7d   :  { %681 = vmatprep.subr.bf16.mxu0 %v938_v19 }
  0x80   :  { %682 = vmatpush1.bf16.msra.mxu0 %v940_v20 }
 0x12b   :  { %v833_v50 = vpop.f32.mrb[0].mxu1 }
 0x12c   :  { %v834_v52 = vpop.f32.mrb[1].mxu1 }
 0x12d   :  { %v835_v53 = vadd.f32 %v834_v52, %v833_v50  ;;  %v836_v54 = vpop.f32.mrb[2].mxu1 }
 0x12e   :  { %v837_v55 = vpop.f32.mrb[3].mxu1 }
 0x12f   :  { %v251_v56 = vadd.f32 %v835_v53, %v740_v51  ;;  %v838_v57 = vadd.f32 %v837_v55, %v836_v54  ;;  %v479_v54 = vld [vmem:[%s1201_s6] sm:$0x3]  ;;  %s1083_s6 = smov [#allocation8]  }
 0x130   :  { %v484_v55 = vrot.slane %v479_v54, %v290_v23  ;;  %s727_s22 = sshll.u32 %s1083_s6, 4  ;;  %s728_s22 = int_to_ptr.vmem [resolvable:$true] %s727_s22 }
 0x131   :  { %v759_v58 = vmul.f32 -1.442695, %v251_v56  ;;  %v254_v59 = vadd.f32 %v838_v57, %v740_v51  ;;  %v488_v56 = vrot.slane %v479_v54, %v294_v25  ;;  %s1047_s23 = scalar_lea.vmem %s728_s22, 512  ;;  %p1052_p11 = scmp.lt.s32.totalorder %s728_s22, %s728_s22 }
 0x132   :  { %p1048_p10 = scmp.ne.s32.totalorder %s728_s22, %s1047_s23  ;;  %p1053_p12 = scmp.lt.s32.totalorder %s1047_s23, %s1047_s23 }
 0x133   :  { %941 = vpow2.f32 %v759_v58  ;;  %v760_v60 = vmul.f32 -1.442695, %v254_v59 }
 0x134   :  { %p1054_p13 = por %p1053_p12, %p1052_p11 }
 0x135   :  { %943 = vpow2.f32 %v760_v60 }
 0x136   :  { %p1055_p0 = pnand %p1054_p13, %p1048_p10 }
 0x13d   :  { %v942_v61 = vpop.eup %941 }
 0x13e   :  { %v263_v62 = vadd.f32 1.0, %v942_v61 }
 0x13f   :  { %v944_v63 = vpop.eup %943 }
 0x140   :  { %v264_v0 = vadd.f32 1.0, %v944_v63  ;;  %945 = vrcp.f32 %v263_v62 }
 0x142   :  { %947 = vrcp.f32 %v264_v0 }
 0x14a   :  { %v946_v1 = vpop.eup %945 }
 0x14c   :  { %v948_v2 = vpop.eup %947 }
 0x14d   :  { %v269_v3 = vpack.c.bf16 %v948_v2, %v946_v1 }
 0x14f   :  { %411 = vmatmul.mubr.bf16.vlgmr.msra.gmra.mrb[4].mxu1 %v269_v3 }
 0x222   :  { %v412_v28 = vpop.f32.mrb[4].mxu1 }
 0x223   :  { %v413_v29 = vadd.f32 %v412_v28, %v291_v26  ;;  %v414_v30 = vpop.f32.mrb[5].mxu1 }
 0x224   :  { %v415_v31 = vadd.f32 %v414_v30, %v295_v27  ;;  %v416_v32 = vpop.f32.mrb[6].mxu1 }
 0x225   :  { %v777_v33 = vmul.f32 -1.442695, %v413_v29  ;;  %v417_v34 = vadd.f32 %v416_v32, %v291_v26  ;;  %v418_v35 = vpop.f32.mrb[7].mxu1 }
 0x226   :  { %v778_v36 = vmul.f32 -1.442695, %v415_v31  ;;  %v419_v37 = vadd.f32 %v418_v35, %v295_v27 }
 0x227   :  { %949 = vpow2.f32 %v777_v33  ;;  %v779_v38 = vmul.f32 -1.442695, %v417_v34 }
 0x228   :  { %951 = vpow2.f32 %v778_v36  ;;  %v780_v39 = vmul.f32 -1.442695, %v419_v37 }
 0x229   :  { %953 = vpow2.f32 %v779_v38 }
 0x22a   :  { %955 = vpow2.f32 %v780_v39 }
 0x231   :  { %v950_v40 = vpop.eup %949 }
 0x232   :  { %v952_v41 = vpop.eup %951  ;;  %v433_v42 = vadd.f32 1.0, %v950_v40 }
 0x233   :  { %v954_v43 = vpop.eup %953  ;;  %v434_v44 = vadd.f32 1.0, %v952_v41 }
 0x234   :  { %v956_v45 = vpop.eup %955  ;;  %957 = vrcp.f32 %v433_v42  ;;  %v435_v46 = vadd.f32 1.0, %v954_v43 }
 0x235   :  { %959 = vrcp.f32 %v434_v44  ;;  %v436_v47 = vadd.f32 1.0, %v956_v45 }
 0x236   :  { %961 = vrcp.f32 %v435_v46 }
 0x237   :  { %963 = vrcp.f32 %v436_v47 }
 0x23e   :  { %v958_v48 = vpop.eup %957 }
 0x23f   :  { %v960_v49 = vpop.eup %959 }
 0x240   :  { %v962_v50 = vpop.eup %961 }
 0x241   :  { %v964_v51 = vpop.eup %963  ;;  %v445_v52 = vpack.c.bf16 %v962_v50, %v958_v48 }
 0x242   :  { %v446_v53 = vpack.c.bf16 %v964_v51, %v960_v49 }
 0x244   :  { %683 = vmatprep.mubr.bf16.mxu0 %v446_v53 }
 0x245   :  { %684 = vmatmul.mubr.bf16.vlgmr.msra.gmra.mrb[0].mxu0 %v445_v52 }
 0x318   :  { %v685_v57 = vpop.f32.mrb[0].mxu0 }
 0x319   :  { %v686_v58 = vadd.f32 %v685_v57, %v484_v55  ;;  %v687_v59 = vpop.f32.mrb[1].mxu0 }
 0x31a   :  { %v688_v60 = vadd.f32 %v687_v59, %v488_v56  ;;  %v689_v61 = vpop.f32.mrb[2].mxu0 }
 0x31b   :  { %v813_v62 = vmul.f32 -1.442695, %v686_v58  ;;  %v690_v63 = vadd.f32 %v689_v61, %v484_v55  ;;  %v691_v0 = vpop.f32.mrb[3].mxu0 }
 0x31c   :  { %v814_v1 = vmul.f32 -1.442695, %v688_v60  ;;  %v692_v2 = vadd.f32 %v691_v0, %v488_v56 }
 0x31d   :  { %965 = vpow2.f32 %v813_v62  ;;  %v815_v3 = vmul.f32 -1.442695, %v690_v63 }
 0x31e   :  { %967 = vpow2.f32 %v814_v1  ;;  %v816_v4 = vmul.f32 -1.442695, %v692_v2 }
 0x31f   :  { %969 = vpow2.f32 %v815_v3 }
 0x320   :  { %971 = vpow2.f32 %v816_v4 }
 0x327   :  { %v966_v5 = vpop.eup %965 }
 0x328   :  { %v968_v6 = vpop.eup %967  ;;  %v706_v7 = vadd.f32 1.0, %v966_v5 }
 0x329   :  { %v970_v8 = vpop.eup %969  ;;  %v707_v9 = vadd.f32 1.0, %v968_v6 }
 0x32a   :  { %v972_v10 = vpop.eup %971  ;;  %973 = vrcp.f32 %v706_v7  ;;  %v708_v11 = vadd.f32 1.0, %v970_v8 }
 0x32b   :  { %975 = vrcp.f32 %v707_v9  ;;  %v709_v12 = vadd.f32 1.0, %v972_v10 }
 0x32c   :  { %977 = vrcp.f32 %v708_v11 }
 0x32d   :  { %979 = vrcp.f32 %v709_v12 }
 0x334   :  { %v974_v13 = vpop.eup %973 }
 0x335   :  { %v976_v14 = vpop.eup %975  ;;  %718 = vst [vmem:[#allocation8] sm:$0xff] %v974_v13 }
 0x336   :  { %v978_v15 = vpop.eup %977  ;;  %719 = vst [vmem:[#allocation8 + $0x8] sm:$0xff] %v976_v14 }
 0x337   :  { %v980_v16 = vpop.eup %979  ;;  %720 = vst [vmem:[#allocation8 + $0x10] sm:$0xff] %v978_v15 }
 0x338   :  { %721 = vst [vmem:[#allocation8 + $0x18] sm:$0xff] %v980_v16 }
 0x339   :  { %1058 = shalt.err (!%p1055_p0)
}
 0x33a   :  { %s1059_s25 = scalar_lea.hbm %s1202_s7, 512 }
 0x33b   :  { %p1060_p1 = scmp.ne.s32.totalorder %s1202_s7, %s1059_s25  ;;  %p1063_p2 = scmp.lt.u32.totalorder %s1059_s25, %s1202_s7 }
 0x33d   :  { %p1065_p3 = pnand %p1063_p2, %p1060_p1 }
 0x33f   :  { %1068 = shalt.err (!%p1065_p3)
}
 0x340   :  { %s1084_s30 = smov 256   ;;  %s1085_s8 = smov 16  }
 0x341   :  { %733 = dma.vmem_to_hbm [thread:$0]  %s728_s22, 512, %s1202_s7, [#allocation4], %s1084_s30, %s1084_s30, %s1085_s8  }
 0x342   :  { %1073 = dma.done.wait [#allocation4], 512  }
 0x343   :  { %1074 = vsyncadd [#allocation4], 4294966784 }
 0x344   :  { %737 = vsyncpa [#allocation3], 1 }
 0x345   :  { %738 = vsyncpa [#allocation6], 1 }
 0x346   :  { %739 = vsyncpa [#allocation4], 1 }

</bundles_post_ra>
